<compile_context>
chip_gen: v7x
topology: tpu7x:2x2x1
jax: 0.10.0
libtpu: 0.0.40
codegen_flags: <defaults>
</compile_context>

<pallas_src>
import functools
import math

import jax
import jax.numpy as jnp
from jax.experimental import pallas as pl
from jax.experimental.pallas import tpu as pltpu


def _attention_head_kernel(x_ref, w_ref, o_ref):
    # x_ref: (Bt, S, D) input block
    # w_ref: (D, 3*Hp) fused, lane-aligned [K | Q*scale | V] weight (zero-padded)
    # o_ref: (Bt, S*H)  lane-dense output block
    Bt, S, D = x_ref.shape
    Hp = w_ref.shape[1] // 3
    H = o_ref.shape[1] // S
    in_dtype = x_ref.dtype

    # One fused projection matmul for K, Q, V over all Bt*S rows.
    # Merging (Bt, S) -> Bt*S is a free relayout: S % 8 == 0, lane dim untouched.
    x2d = x_ref[...].reshape(Bt * S, D)
    qkv = jnp.dot(x2d, w_ref[...], preferred_element_type=jnp.float32)  # (Bt*S, 3Hp)

    # Each segment starts on a 128-lane boundary -> aligned slices.
    k = qkv[:, 0 * Hp:1 * Hp].astype(in_dtype).reshape(Bt, S, Hp)
    q = qkv[:, 1 * Hp:2 * Hp].astype(in_dtype).reshape(Bt, S, Hp)
    v = qkv[:, 2 * Hp:2 * Hp + H].astype(in_dtype).reshape(Bt, S, H)

    # scores = (Q / sqrt(H)) @ K^T   (scale already folded into Wq).
    # Contracting over the padded Hp lanes is exact: padded columns are zero.
    scores = jnp.einsum("bqh,bkh->bqk", q, k,
                        preferred_element_type=jnp.float32)             # (Bt, S, S)

    # Numerically stable softmax with DEFERRED normalization: normalize the
    # O(S*H) output instead of the O(S*S) attention matrix.
    m = jnp.max(scores, axis=-1, keepdims=True)
    e = jnp.exp(scores - m)                                             # (Bt, S, S)
    out_unnorm = jnp.einsum("bqk,bkh->bqh", e.astype(in_dtype), v,
                            preferred_element_type=jnp.float32)         # (Bt, S, H)
    denom = jnp.sum(e, axis=-1, keepdims=True)                          # (Bt, S, 1)
    out = out_unnorm * pl.reciprocal(denom, approx=True)                # EUP slot

    # Lane-dense store: last dim S*H (128 at the test shape) -> unmasked vst.
    o_ref[...] = out.reshape(Bt, S * H).astype(o_ref.dtype)

    # TODO(synk): for large S (>= ~1k on v7x's 64 MiB VMEM, ~2k on v5e/v6e),
    # tile the KV axis flash-style (online softmax) instead of materializing
    # the full (Bt, S, S) scores tile.


def make_fused_qkv_weight(wk, wq, wv, head_size):
    """Fuse [K | Q*scale | V] into one (D, 3*Hp) matrix, each segment zero-padded
    to a 128-lane multiple. Call ONCE at parameter-init time (hoisted concat)."""
    D, H = wk.shape
    Hp = pl.cdiv(H, 128) * 128
    scale = 1.0 / math.sqrt(float(head_size))

    def seg(w):
        return jnp.pad(w, ((0, 0), (0, Hp - H))) if Hp != H else w

    return jnp.concatenate([seg(wk), seg(wq * scale), seg(wv)], axis=1)


def _pick_batch_tile(B, S, target_rows=256):
    """Batch elements per grid step. Split the batch axis only when each grid
    step still feeds the MXU >= target_rows rows of the fused projection;
    otherwise run the whole batch in one step (amortizes ~0.35us/step)."""
    if B * S <= 2 * target_rows:
        return B
    bt = min(B, max(1, pl.cdiv(target_rows, S)))
    # Output block is (Bt, S*H): a partial (Bt < B) leading dim must be a
    # multiple of 8, and Bt must divide B to avoid padded blocks.
    bt = ((bt + 7) // 8) * 8
    while bt < B and B % bt != 0:
        bt += 8
    return bt if bt < B else B


@functools.partial(jax.jit, static_argnames=("head_size",))
def attention_head(x, w_qkv, head_size):
    """x: [B, S, D]; w_qkv: fused (D, 3*Hp) weight from make_fused_qkv_weight."""
    B, S, D = x.shape
    H = head_size
    Hp3 = w_qkv.shape[1]

    Bt = _pick_batch_tile(B, S)
    grid = (B // Bt,)

    # VMEM budget: double-buffered blocks + f32 intermediates, with 2x headroom,
    # clamped to [32 MiB, 64 MiB] so it fits the smallest physical VMEM (v7x).
    itemsize = x.dtype.itemsize
    blocks = 2 * (Bt * S * D + D * Hp3 + Bt * S * H) * itemsize
    interm = Bt * S * (2 * Hp3 + 2 * S + 4 * H) * 4
    vmem_limit = int(min(64 << 20, max(32 << 20, 2 * (blocks + interm))))

    out = pl.pallas_call(
        _attention_head_kernel,
        out_shape=jax.ShapeDtypeStruct((B, S * H), x.dtype),
        grid_spec=pltpu.PrefetchScalarGridSpec(
            num_scalar_prefetch=0,
            grid=grid,
            in_specs=[
                pl.BlockSpec((Bt, S, D), lambda b: (b, 0, 0)),   # x batch block
                pl.BlockSpec((D, Hp3), lambda b: (0, 0)),        # fused weight (resident)
            ],
            out_specs=pl.BlockSpec((Bt, S * H), lambda b: (b, 0)),
        ),
        compiler_params=pltpu.CompilerParams(
            dimension_semantics=("parallel",),
            vmem_limit_bytes=vmem_limit,
        ),
    )(x, w_qkv)
    return out.reshape(B, S, H)


def reference_attention_head(x, wk, wq, wv, head_size):
    k = jnp.einsum("bsd,dh->bsh", x, wk)
    q = jnp.einsum("bsd,dh->bsh", x, wq)
    v = jnp.einsum("bsd,dh->bsh", x, wv)
    scores = jnp.einsum("bqh,bkh->bqk", q, k) / jnp.sqrt(
        jnp.asarray(head_size, jnp.float32)
    )
    attn = jax.nn.softmax(scores, axis=-1)
    return jnp.einsum("bqk,bkh->bqh", attn, v)


if __name__ == "__main__":
    # Small shapes consistent with the module's forward: x -> [B, S, in_size]
    B, S, IN_SIZE, HEAD_SIZE = 2, 8, 32, 16

    key = jax.random.PRNGKey(0)
    kx, kk, kq, kv = jax.random.split(key, 4)

    x = jax.random.normal(kx, (B, S, IN_SIZE), dtype=jnp.float32)
    # torch nn.Linear(in_size, head_size, bias=False) stores weight [H, D];
    # we initialize directly in the transposed [D, H] layout used here.
    scale = 1.0 / math.sqrt(IN_SIZE)
    wk = jax.random.uniform(kk, (IN_SIZE, HEAD_SIZE), jnp.float32, -scale, scale)
    wq = jax.random.uniform(kq, (IN_SIZE, HEAD_SIZE), jnp.float32, -scale, scale)
    wv = jax.random.uniform(kv, (IN_SIZE, HEAD_SIZE), jnp.float32, -scale, scale)

    # Weight fusion / padding / scale-folding done once (hoisted out of the call).
    w_qkv = make_fused_qkv_weight(wk, wq, wv, HEAD_SIZE)

    out = attention_head(x, w_qkv, HEAD_SIZE)
    out = jax.block_until_ready(out)

    ref = reference_attention_head(x, wk, wq, wv, HEAD_SIZE)
    assert out.shape == (B, S, HEAD_SIZE)
    # Tolerance covers the EUP approximate reciprocal in the deferred softmax
    # normalization and the reordered (scale-into-Wq) multiply.
    assert jnp.allclose(out, ref, atol=1e-3, rtol=1e-3), "mismatch vs reference"

    print("KERNEL_OK")
</pallas_src>

<mosaic_0001>
module attributes {stable_mosaic.version = 11 : i64} {
  func.func @_attention_head_kernel(%arg0: i32, %arg1: memref<2x8x32xf32, #tpu.memory_space<vmem>>, %arg2: memref<32x384xf32, #tpu.memory_space<vmem>>, %arg3: memref<2x128xf32, #tpu.memory_space<vmem>>) attributes {dimension_semantics = [#tpu.dimension_semantics<parallel>], iteration_bounds = array<i64: 1>, scalar_prefetch = 0 : i64, scratch_operands = 0 : i64, tpu.core_type = #tpu.core_type<tc>, window_params = [{transform_indices = @transform_0, window_bounds = array<i64: 2, 8, 32>}, {pipeline_mode = #tpu.pipeline_mode<synchronous>, transform_indices = @transform_1, window_bounds = array<i64: 32, 384>}, {transform_indices = @transform_2, window_bounds = array<i64: 2, 128>}]} {
    %c0 = arith.constant 0 : index
    %c0_0 = arith.constant 0 : index
    %c0_1 = arith.constant 0 : index
    %0 = vector.load %arg1[%c0, %c0_0, %c0_1] : memref<2x8x32xf32, #tpu.memory_space<vmem>>, vector<2x8x32xf32>
    %1 = vector.shape_cast %0 : vector<2x8x32xf32> to vector<16x32xf32>
    %c0_2 = arith.constant 0 : index
    %c0_3 = arith.constant 0 : index
    %2 = vector.load %arg2[%c0_2, %c0_3] : memref<32x384xf32, #tpu.memory_space<vmem>>, vector<32x384xf32>
    %cst = arith.constant dense<0.000000e+00> : vector<16x384xf32>
    %3 = tpu.matmul %1, %2, %cst {dimension_numbers = #tpu.dot_dimension_numbers<[1], [0], [0], [1], [0, 0, 1, 1], [], []>} : vector<16x32xf32>, vector<32x384xf32>, vector<16x384xf32> -> vector<16x384xf32>
    %4 = vector.extract_strided_slice %3 {offsets = [0, 0], sizes = [16, 128], strides = [1, 1]} : vector<16x384xf32> to vector<16x128xf32>
    %5 = vector.shape_cast %4 : vector<16x128xf32> to vector<2x8x128xf32>
    %6 = vector.extract_strided_slice %3 {offsets = [0, 128], sizes = [16, 128], strides = [1, 1]} : vector<16x384xf32> to vector<16x128xf32>
    %7 = vector.shape_cast %6 : vector<16x128xf32> to vector<2x8x128xf32>
    %8 = vector.extract_strided_slice %3 {offsets = [0, 256], sizes = [16, 16], strides = [1, 1]} : vector<16x384xf32> to vector<16x16xf32>
    %9 = vector.shape_cast %8 : vector<16x16xf32> to vector<2x8x16xf32>
    "tpu.trace_start"() <{level = 10 : i32, message = "bqh,bkh->bqk"}> : () -> ()
    %cst_4 = arith.constant dense<0.000000e+00> : vector<2x8x8xf32>
    %10 = tpu.matmul %7, %5, %cst_4 {dimension_numbers = #tpu.dot_dimension_numbers<[2], [2], [1], [1], [0, 0, 0, 1, 1, 1], [0], [0]>} : vector<2x8x128xf32>, vector<2x8x128xf32>, vector<2x8x8xf32> -> vector<2x8x8xf32>
    "tpu.trace_stop"() : () -> ()
    %cst_5 = arith.constant dense<0xFF800000> : vector<2x8xf32>
    %11 = vector.multi_reduction <maximumf>, %10, %cst_5 [2] : vector<2x8x8xf32> to vector<2x8xf32>
    %12 = vector.shape_cast %11 : vector<2x8xf32> to vector<2x8x1xf32>
    %13 = vector.broadcast %12 : vector<2x8x1xf32> to vector<2x8x8xf32>
    %14 = arith.subf %10, %13 : vector<2x8x8xf32>
    %15 = math.exp %14 : vector<2x8x8xf32>
    "tpu.trace_start"() <{level = 10 : i32, message = "bqk,bkh->bqh"}> : () -> ()
    %cst_6 = arith.constant dense<0.000000e+00> : vector<2x8x16xf32>
    %16 = tpu.matmul %15, %9, %cst_6 {dimension_numbers = #tpu.dot_dimension_numbers<[2], [1], [1], [2], [0, 0, 0, 1, 1, 2], [0], [0]>} : vector<2x8x8xf32>, vector<2x8x16xf32>, vector<2x8x16xf32> -> vector<2x8x16xf32>
    "tpu.trace_stop"() : () -> ()
    %cst_7 = arith.constant dense<0.000000e+00> : vector<2x8xf32>
    %17 = vector.multi_reduction <add>, %15, %cst_7 [2] : vector<2x8x8xf32> to vector<2x8xf32>
    %18 = vector.shape_cast %17 : vector<2x8xf32> to vector<2x8x1xf32>
    %19 = tpu.reciprocal %18 {approx = true} : vector<2x8x1xf32> -> vector<2x8x1xf32>
    %20 = vector.broadcast %19 : vector<2x8x1xf32> to vector<2x8x16xf32>
    %21 = arith.mulf %16, %20 : vector<2x8x16xf32>
    %22 = vector.shape_cast %21 : vector<2x8x16xf32> to vector<2x128xf32>
    %c0_8 = arith.constant 0 : index
    %c0_9 = arith.constant 0 : index
    %23 = vector.load %arg3[%c0_8, %c0_9] : memref<2x128xf32, #tpu.memory_space<vmem>>, vector<2x128xf32>
    tpu.vector_store %arg3[%c0_8, %c0_9], %22 {strides = array<i32>} : memref<2x128xf32, #tpu.memory_space<vmem>>, vector<2x128xf32>,
    return
  }
  func.func @transform_0(%arg0: i32) -> (i32, i32, i32) {
    %c0_i32 = arith.constant 0 : i32
    %c0_i32_0 = arith.constant 0 : i32
    %c0_i32_1 = arith.constant 0 : i32
    return %arg0, %c0_i32, %c0_i32_0 : i32, i32, i32
  }
  func.func @transform_1(%arg0: i32) -> (i32, i32) {
    %c0_i32 = arith.constant 0 : i32
    %c0_i32_0 = arith.constant 0 : i32
    %c0_i32_1 = arith.constant 0 : i32
    return %c0_i32, %c0_i32_0 : i32, i32
  }
  func.func @transform_2(%arg0: i32) -> (i32, i32) {
    %c0_i32 = arith.constant 0 : i32
    %c0_i32_0 = arith.constant 0 : i32
    return %arg0, %c0_i32 : i32, i32
  }
}

</mosaic_0001>

<bundles_post_ra>
// kernel: attention_head.1
= control target key start
LH: loop header
LB: loop body
LE: loop exit
PB: predicated region body
PF: predicated region fallthrough
CT: control target
= control target key end

     0   :  { %7 = vsyncpa [#allocation3], 0  ;;  %s865_s0 = inlined_call_operand.hbm [shape: f32[2,8,32], index: 0, kind: input, shape index: {}]   ;;  %s866_s1 = inlined_call_operand.hbm [shape: f32[32,384], index: 1, kind: input, shape index: {}]   ;;  %s867_s2 = inlined_call_operand.vmem [shape: f32[2,128], index: 2, kind: output, shape index: {}]  }
   0x1   :  { %8 = vsyncpa [#allocation5], 0  ;;  %s775_s9 = smov [#allocation2]   ;;  %s727_s13 = scalar_lea.hbm %s865_s0, 256 }
   0x2   :  { %s14_s10 = sshll.u32 %s775_s9, 4  ;;  %p728_p0 = scmp.ne.s32.totalorder %s865_s0, %s727_s13  ;;  %s15_s10 = int_to_ptr.vmem [resolvable:$true] %s14_s10 }
   0x3   :  { %p731_p1 = scmp.lt.u32.totalorder %s727_s13, %s865_s0 }
   0x5   :  { %p733_p2 = pnand %p731_p1, %p728_p0 }
   0x7   :  { %736 = shalt.err (!%p733_p2)
}
   0x8   :  { %s737_s18 = scalar_lea.vmem %s15_s10, 256  ;;  %p742_p4 = scmp.lt.s32.totalorder %s15_s10, %s15_s10 }
   0x9   :  { %p738_p3 = scmp.ne.s32.totalorder %s15_s10, %s737_s18  ;;  %p743_p5 = scmp.lt.s32.totalorder %s737_s18, %s737_s18 }
   0xb   :  { %p744_p6 = por %p743_p5, %p742_p4 }
   0xd   :  { %p745_p7 = pnand %p744_p6, %p738_p3 }
   0xf   :  { %748 = shalt.err (!%p745_p7)
}
  0x10   :  { %s776_s19 = smov 128   ;;  %s777_s20 = smov 8  }
  0x11   :  { %20 = dma.hbm_to_vmem [thread:$0]  %s865_s0, 256, %s15_s10, [#allocation3], %s776_s19, %s776_s19, %s777_s20  }
  0x12   :  { %s778_s23 = smov [#allocation4]   ;;  %s749_s27 = scalar_lea.hbm %s866_s1, 1536 }
  0x13   :  { %s26_s24 = sshll.u32 %s778_s23, 4  ;;  %p750_p8 = scmp.ne.s32.totalorder %s866_s1, %s749_s27  ;;  %s27_s24 = int_to_ptr.vmem [resolvable:$true] %s26_s24 }
  0x14   :  { %p753_p9 = scmp.lt.u32.totalorder %s749_s27, %s866_s1 }
  0x16   :  { %p755_p10 = pnand %p753_p9, %p750_p8 }
  0x18   :  { %758 = shalt.err (!%p755_p10)
}
  0x19   :  { %s759_s4 = scalar_lea.vmem %s27_s24, 1536  ;;  %p764_p12 = scmp.lt.s32.totalorder %s27_s24, %s27_s24 }
  0x1a   :  { %p760_p11 = scmp.ne.s32.totalorder %s27_s24, %s759_s4  ;;  %p765_p13 = scmp.lt.s32.totalorder %s759_s4, %s759_s4 }
  0x1c   :  { %p766_p0 = por %p765_p13, %p764_p12 }
  0x1e   :  { %p767_p1 = pnand %p766_p0, %p760_p11 }
  0x20   :  { %770 = shalt.err (!%p767_p1)
}
  0x21   :  { %s779_s0 = smov 384   ;;  %s780_s5 = smov 24  }
  0x22   :  { %32 = dma.hbm_to_vmem [thread:$0]  %s866_s1, 1536, %s27_s24, [#allocation5], %s779_s0, %s779_s0, %s780_s5  }
  0x23   :  { %771 = dma.done.wait [#allocation3], 256  }
  0x24   :  { %772 = vsyncadd [#allocation3], 4294967040 }
  0x25   :  { %773 = dma.done.wait [#allocation5], 1536  }
  0x26   :  { %774 = vsyncadd [#allocation5], 4294965760  ;;  %v781_v0 = vmov 0.0   ;;  %v42_v1 = vld [vmem:[#allocation4 + $0x8] sm:$0xff]  ;;  %v45_v2 = vld [vmem:[#allocation4 + $0x20] sm:$0xff]  ;;  %vm53_vm0 = vcmask 261120   ;;  %v525_v47 = vlaneseq }
  0x27   :  { %124 = vmatprep.mubr.f32.mxu0 %v781_v0  ;;  %v41_v3 = vld [vmem:[#allocation4] sm:$0xff]  ;;  %v686_v4 = vpack.c.bf16 %v45_v2, %v42_v1  ;;  %v44_v5 = vld [vmem:[#allocation4 + $0x18] sm:$0xff]  ;;  %v51_v7 = vld [vmem:[#allocation4 + $0x50] sm:$0xff]  ;;  %vm782_vm1 = vmmov 0   ;;  %vm352_vm2 = vcmask 64512   ;;  %s785_s1 = smov 32  }
  0x28   :  { %v48_v6 = vld [vmem:[#allocation4 + $0x38] sm:$0xff]  ;;  %v688_v8 = vpack.c.bf16 %v44_v5, %v41_v3  ;;  %v47_v10 = vld [vmem:[#allocation4 + $0x30] sm:$0xff]  ;;  %v50_v11 = vld [vmem:[#allocation4 + $0x48] sm:$0xff]  ;;  %v783_v45 = vmov 1983009808   ;;  %v526_v49 = vshrl.u32 %v525_v47, 7 }
  0x29   :  { %v690_v9 = vpack.c.bf16 %v51_v7, %v48_v6  ;;  %v39_v12 = vld [vmem:[#allocation2] sm:$0xff]  ;;  %687 = vmatprep.subr.bf16.mxu0 %v686_v4  ;;  %v46_v14 = vld [vmem:[#allocation4 + $0x28] sm:$0xff]  ;;  %v692_v15 = vpack.c.bf16 %v50_v11, %v47_v10  ;;  %v49_v17 = vld [vmem:[#allocation4 + $0x40] sm:$0xff]  ;;  %v523_v46 = vunpack.c.l.s4 %v783_v45  ;;  %v784_v50 = vmov 1934713408   ;;  %s786_s8 = smov 16  }
  0x2a   :  { %v43_v13 = vld [vmem:[#allocation4 + $0x10] sm:$0xff]  ;;  %663 = vmatprep.mubr.msk.f32.mxu1 %vm53_vm0, %v39_v12  ;;  %689 = vmatpush1.bf16.msra.mxu0 %v688_v8  ;;  %v52_v18 = vld [vmem:[#allocation4 + $0x58] sm:$0xff]  ;;  %v554_v51 = vunpack.c.l.s4 %v784_v50  ;;  %s787_s9 = smov 48   ;;  %s788_s10 = smov 80   ;;  %vm615_vm3 = vcmask 130048   ;;  %vm618_vm4 = vcmask 392192  }
  0x2b   :  { %v694_v16 = vpack.c.bf16 %v46_v14, %v43_v13  ;;  %691 = vmatprep.subr.bf16.mxu0 %v690_v9  ;;  %v698_v19 = vpack.c.bf16 %v52_v18, %v49_v17  ;;  %v40_v20 = vld [vmem:[#allocation2 + $0x8] sm:$0xff]  ;;  %v524_v48 = vunpack.c.0.s8 %v523_v46  ;;  %s789_s11 = smov 64   ;;  %s790_s12 = smov 112   ;;  %vm620_vm5 = vcmask 523264  }
  0x2c   :  { %v555_v57 = vunpack.c.0.s8 %v554_v51  ;;  %s791_s13 = smov 96   ;;  %vm622_vm6 = vcmask 654336   ;;  %vm624_vm7 = vcmask 785408   ;;  %vm626_vm8 = vcmask 916480  }
  0x2d   :  { %695 = vmatprep.subr.bf16.mxu1 %v694_v16  ;;  %v527_v56 = vsub.s32 %v524_v48, %v526_v49 }
  0x2e   :  { %697 = vmatpush3.bf16.msra.mxu1 %v694_v16  ;;  %693 = vmatpush1.bf16.msra.mxu0 %v692_v15  ;;  %v558_v3 = vsub.s32 %v555_v57, %v526_v49 }
  0x2f   :  { %699 = vmatprep.subr.bf16.mxu1 %v698_v19  ;;  %671 = vmatprep.subr.mxu0 %v781_v0 }
  0x31   :  { %635 = vmatmul.mubr.msk.f32.vlgmr.msra.gmra.mrb[0].mxu0 %vm53_vm0, %v39_v12 }
  0x32   :  { %701 = vmatpush3.bf16.msra.mxu1 %v698_v19  ;;  %130 = vmatprep.mubr.f32.mxu0 %v781_v0 }
  0x33   :  { %666 = vmatprep.subr.mxu1 %v781_v0 }
  0x35   :  { %664 = vmatmul.mubr.msk.f32.vlgmr.msra.gmra.mrb[0].mxu1 %vm53_vm0, %v40_v20  ;;  %636 = vmatmul.mubr.msk.f32.gmra.mrb[2].mxu0 %vm53_vm0, %v40_v20 }
  0x36   :  { %668 = vmatprep.mubr.msk.f32.mxu1 %vm782_vm1, %v781_v0  ;;  %673 = vmatprep.mubr.msk.f32.mxu0 %vm782_vm1, %v781_v0 }
 0x104   :  { %v126_v21 = vpop.f32.mrb[0].mxu0 }
 0x105   :  { %v128_v22 = vpop.f32.mrb[1].mxu0  ;;  %667 = vmatpush3.xpose.msra.mxu1 %v126_v21 }
 0x106   :  { %676 = vmatprep.subr.mxu1 %v781_v0 }
 0x108   :  { %v665_v23 = vpop.f32.mrb[0].mxu1  ;;  %v132_v24 = vpop.f32.mrb[2].mxu0  ;;  %669 = vmatmul.mubr.f32.vlgmr.msra.gmra.mrb[2].mxu1 %v128_v22 }
 0x109   :  { %v203_v25 = vpop.f32.mrb[1].mxu1  ;;  %v134_v26 = vpop.f32.mrb[3].mxu0  ;;  %672 = vmatpush3.xpose.msra.mxu0 %v132_v24  ;;  %678 = vmatprep.mubr.msk.f32.mxu1 %vm782_vm1, %v781_v0 }
 0x10a   :  { %677 = vmatpush3.msra.mxu1 %v203_v25  ;;  %681 = vmatprep.subr.mxu0 %v781_v0 }
 0x10c   :  { %674 = vmatmul.mubr.f32.vlgmr.msra.gmra.mrb[4].mxu0 %v134_v26 }
 0x10d   :  { %682 = vmatpush3.msra.mxu0 %v665_v23  ;;  %683 = vmatprep.mubr.msk.f32.mxu0 %vm782_vm1, %v781_v0 }
 0x1db   :  { %v278_v27 = vpop.f32.mrb[2].mxu1 }
 0x1dc   :  { %v670_v28 = vpop.f32.mrb[3].mxu1  ;;  %v353_v29 = vsel %vm352_vm2, %v278_v27, -inf }
 0x1dd   :  { %354 = vmax.xlane.f32.xlu0 %v353_v29 }
 0x1df   :  { %v348_v30 = vpop.f32.mrb[4].mxu0 }
 0x1e0   :  { %v675_v31 = vpop.f32.mrb[5].mxu0  ;;  %v356_v32 = vsel %vm352_vm2, %v348_v30, -inf }
 0x1e1   :  { %357 = vmax.xlane.f32.xlu0 %v356_v32 }
 0x26a   :  { %v355_v33 = vpop.xlane.xlu0 %354 }
 0x26b   :  { %v359_v34 = vsub.f32 %v278_v27, %v355_v33 }
 0x26d   :  { %v361_v35 = vmul.f32 1.442695, %v359_v34 }
 0x26e   :  { %v358_v36 = vpop.xlane.xlu0 %357 }
 0x26f   :  { %719 = vpow2.f32 %v361_v35  ;;  %v360_v37 = vsub.f32 %v348_v30, %v358_v36 }
 0x271   :  { %v363_v38 = vmul.f32 1.442695, %v360_v37 }
 0x273   :  { %721 = vpow2.f32 %v363_v38 }
 0x279   :  { %v720_v39 = vpop.eup %719 }
 0x27a   :  { %679 = vmatmul.mubr.msk.f32.vlgmr.msra.gmra.mrb[4].mxu1 %vm352_vm2, %v720_v39  ;;  %v511_v40 = vsel %vm352_vm2, %v720_v39, 0.0 }
 0x27b   :  { %512 = vadd.xlane.f32.xlu1 %v511_v40 }
 0x27d   :  { %v722_v41 = vpop.eup %721 }
 0x27e   :  { %684 = vmatmul.mubr.msk.f32.vlgmr.msra.gmra.mrb[6].mxu0 %vm352_vm2, %v722_v41  ;;  %v514_v42 = vsel %vm352_vm2, %v722_v41, 0.0 }
 0x27f   :  { %515 = vadd.xlane.f32.xlu1 %v514_v42 }
 0x308   :  { %v513_v43 = vpop.xlane.xlu1 %512 }
 0x309   :  { %723 = vrcp.f32 %v513_v43 }
 0x30c   :  { %v516_v44 = vpop.xlane.xlu1 %515 }
 0x30d   :  { %725 = vrcp.f32 %v516_v44 }
 0x313   :  { %v724_v52 = vpop.eup %723 }
 0x317   :  { %v726_v58 = vpop.eup %725 }
 0x34d   :  { %v434_v53 = vpop.f32.mrb[4].mxu1 }
 0x34e   :  { %v519_v54 = vmul.f32 %v724_v52, %v434_v53  ;;  %v680_v55 = vpop.f32.mrb[5].mxu1 }
 0x350   :  { %v521_v60 = vcombine.high %v519_v54, %v781_v0  ;;  %v528_v63 = vrot.slane %v519_v54, %v527_v56 }
 0x351   :  { %v507_v59 = vpop.f32.mrb[6].mxu0 }
 0x352   :  { %v520_v61 = vmul.f32 %v726_v58, %v507_v59  ;;  %v685_v62 = vpop.f32.mrb[7].mxu0  ;;  %v535_v4 = vrot.slane %v521_v60, %v527_v56 }
 0x354   :  { %v536_v1 = vcombine.high %v520_v61, %v781_v0  ;;  %v543_v2 = vrot.slane %v520_v61, %v527_v56 }
 0x356   :  { %v550_v5 = vrot.slane %v536_v1, %v527_v56  ;;  %v551_v6 = vcombine.low %v528_v63, %v543_v2  ;;  %v552_v7 = vcombine.high %v528_v63, %v543_v2 }
 0x358   :  { %v567_v8 = vcombine.low %v535_v4, %v550_v5  ;;  %v568_v9 = vcombine.high %v535_v4, %v550_v5  ;;  %v566_v10 = vrot.slane %v552_v7, %v558_v3  ;;  %v559_v11 = vrot.slane %v551_v6, %v558_v3 }
 0x35a   :  { %592 = vrot.lane.b32.xlu1 %v566_v10, %s785_s1  ;;  %v583_v12 = vcombine.high %v559_v11, %v781_v0  ;;  %v575_v13 = vrot.slane %v567_v8, %v558_v3  ;;  %v584_v14 = vcombine.high %v566_v10, %v781_v0  ;;  %v582_v16 = vrot.slane %v568_v9, %v558_v3 }
 0x35c   :  { %588 = vrot.lane.b32.xlu0 %v583_v12, %s786_s8  ;;  %v585_v15 = vcombine.high %v575_v13, %v781_v0  ;;  %v586_v17 = vcombine.high %v582_v16, %v781_v0 }
 0x35e   :  { %596 = vrot.lane.b32.xlu1 %v584_v14, %s787_s9 }
 0x360   :  { %604 = vrot.lane.b32.xlu0 %v585_v15, %s788_s10 }
 0x362   :  { %600 = vrot.lane.b32.xlu1 %v575_v13, %s789_s11 }
 0x364   :  { %612 = vrot.lane.b32.xlu0 %v586_v17, %s790_s12 }
 0x366   :  { %608 = vrot.lane.b32.xlu1 %v582_v16, %s791_s13 }
 0x3cc   :  { %v593_v18 = vpop.permute.xlu1 %592 }
 0x3ce   :  { %v589_v19 = vpop.permute.xlu0 %588 }
 0x3cf   :  { %v616_v20 = vsel %vm615_vm3, %v559_v11, %v589_v19 }
 0x3d0   :  { %v597_v21 = vpop.permute.xlu1 %596  ;;  %v617_v22 = vsel %vm53_vm0, %v616_v20, %v593_v18 }
 0x3d1   :  { %v619_v24 = vsel %vm618_vm4, %v617_v22, %v597_v21 }
 0x3d2   :  { %v605_v23 = vpop.permute.xlu0 %604 }
 0x3d4   :  { %v601_v25 = vpop.permute.xlu1 %600 }
 0x3d5   :  { %v621_v26 = vsel %vm620_vm5, %v619_v24, %v601_v25 }
 0x3d6   :  { %v623_v27 = vsel %vm622_vm6, %v621_v26, %v605_v23  ;;  %v613_v28 = vpop.permute.xlu0 %612 }
 0x3d8   :  { %v609_v0 = vpop.permute.xlu1 %608 }
 0x3d9   :  { %v625_v29 = vsel %vm624_vm7, %v623_v27, %v609_v0 }
 0x3da   :  { %v627_v30 = vsel %vm626_vm8, %v625_v29, %v613_v28 }
 0x3db   :  { %628 = vst [vmem:[%s867_s2] sm:$0x3] %v627_v30 }
 0x3dc   :  { %633 = vsyncpa [#allocation3], 1 }
 0x3dd   :  { %634 = vsyncpa [#allocation5], 1 }

</bundles_post_ra>
